<compile_context>
chip_gen: v6e
topology: v6e:2x2x1
jax: 0.10.0
libtpu: 0.0.40
codegen_flags: <defaults>
</compile_context>

<pallas_src>
import jax
import jax.numpy as jnp
import numpy as np
from jax import lax
from jax.experimental import pallas as pl
from jax.experimental.pallas import tpu as pltpu

_LANE = 128


def _round_up(a, m):
    return (a + m - 1) // m * m


def _make_bce_focal_kernel(gamma, eps, n_valid, tn, n_class, blocks_per_core,
                           needs_mask, faithful):
    gamma = float(gamma)
    coef_b = float(eps) / (n_class - 1.0) if n_class > 1 else 0.0
    coef_a = (1.0 - float(eps)) - coef_b
    sign = -1.0 if faithful else 1.0          # -1.0 reproduces the reference sign bug
    first_pad_blk = n_valid // tn             # first global block containing padded lanes

    def kernel(pred_ref, tgt_ref, alpha_ref, out_ref, acc_ref):
        p = pl.program_id(0)                  # core / partition index ("parallel")
        b = pl.program_id(1)                  # lane-block index within partition

        @pl.when(b == 0)
        def _():
            acc_ref[...] = jnp.zeros_like(acc_ref)

        x = pred_ref[...].astype(jnp.float32)            # (C, tn) logits, lane-dense in N
        tgt = tgt_ref[...]                               # (1, tn) int32 targets
        alpha_col = alpha_ref[...].astype(jnp.float32)   # (C, 1) per-class alpha

        # Softmax over classes (sublane axis); only the target-class prob is needed.
        x_max = jnp.max(x, axis=0, keepdims=True)        # (1, tn)
        ex = jnp.exp(x - x_max)                          # (C, tn)  [EUP]
        denom = jnp.sum(ex, axis=0, keepdims=True)       # (1, tn)

        # Hard one-hot via iota compare (no scatter/gather primitives).
        class_ids = lax.broadcasted_iota(jnp.int32, (n_class, tn), 0)
        hard = (class_ids == tgt).astype(jnp.float32)    # (C, tn)

        e_t = jnp.sum(hard * ex, axis=0, keepdims=True)          # (1, tn)
        alpha_sel = jnp.sum(hard * alpha_col, axis=0, keepdims=True)
        p_t = e_t / denom                                        # softmax prob of target

        # Label smoothing folded algebraically (sum(pt) == 1):
        #   sum(one_hot_smoothed * pt) = coef_a * p_t + coef_b
        probs = sign * (coef_a * p_t + coef_b) + 1e-10
        log_prb = jnp.log(probs)          # NaN in faithful mode (reference bug, on purpose)

        one_minus = 1.0 - probs
        if gamma == 2.0:
            focal = one_minus * one_minus
        elif gamma == 1.0:
            focal = one_minus
        elif gamma == 0.0:
            focal = jnp.ones_like(one_minus)
        else:
            focal = jnp.power(one_minus, gamma)

        per_lane = -alpha_sel * focal * log_prb          # (1, tn) per-sample loss

        if needs_mask:
            glb = p * blocks_per_core + b                # global lane-block index
            @pl.when(glb < first_pad_blk)
            def _():
                acc_ref[...] += per_lane                 # steady state: no masking work
            @pl.when(glb >= first_pad_blk)
            def _():
                lane_ids = glb * tn + lax.broadcasted_iota(jnp.int32, (1, tn), 1)
                acc_ref[...] += jnp.where(lane_ids < n_valid, per_lane, 0.0)
        else:
            acc_ref[...] += per_lane

        @pl.when(b == blocks_per_core - 1)
        def _():
            # Single cross-lane reduce per partition, done once at finalize.
            out_ref[...] = jnp.sum(acc_ref[...], axis=1, keepdims=True)

    return kernel


def bce_focal_loss_pallas(predict, target, gamma=2.0, alpha=None, class_num=2,
                          reduction="mean", eps=0.2, lane_tile=None,
                          faithful_negative_probs=True):
    """predict: (N, C) float logits, target: (N,) int class ids. Returns a scalar loss."""
    # TODO(synk): reduction='none' (unreduced per-sample output) path not implemented.
    assert reduction in ("mean", "sum")
    n, c = predict.shape

    if alpha is None:
        # Reference builds ones(class_num, 1); per-class weights must cover all C classes.
        alpha_col = jnp.ones((c, 1), jnp.float32)
    else:
        alpha_flat = jnp.asarray(alpha, jnp.float32).reshape(-1)
        assert alpha_flat.shape[0] >= c, "alpha must provide a weight per class"
        alpha_col = alpha_flat[:c].reshape(c, 1)

    # Lane-tile sizing from a conservative VMEM budget (safe on v5e/v6e/v7x scoped limits).
    if lane_tile is None:
        itemsize = jnp.dtype(predict.dtype).itemsize
        bytes_per_lane = (c * itemsize + 4) * 2 + 32 + 64   # dbl-buffered pred+tgt, acc, slack
        vmem_budget = 8 * 1024 * 1024
        tn_cap = max(_LANE, (vmem_budget // bytes_per_lane) // _LANE * _LANE)
        lane_tile = min(8192, tn_cap)
    tn = _round_up(min(lane_tile, _round_up(n, _LANE)), _LANE)

    total_blocks = -(-n // tn)
    n_cores = 2 if total_blocks >= 2 else 1          # dual-TC split on v7x; harmless elsewhere
    blocks_per_core = -(-total_blocks // n_cores)
    n_pad = n_cores * blocks_per_core * tn

    # Layout plumbing in the wrapper: classes -> sublanes, samples -> lanes.
    predict_t = jnp.pad(predict.T, ((0, 0), (0, n_pad - n)))
    target_row = jnp.pad(target.reshape(1, n).astype(jnp.int32), ((0, 0), (0, n_pad - n)))

    kernel = _make_bce_focal_kernel(gamma, eps, n, tn, c, blocks_per_core,
                                    needs_mask=(n_pad != n),
                                    faithful=faithful_negative_probs)

    partials = pl.pallas_call(
        kernel,
        out_shape=jax.ShapeDtypeStruct((n_cores, 1), jnp.float32),
        grid_spec=pltpu.PrefetchScalarGridSpec(
            num_scalar_prefetch=0,
            grid=(n_cores, blocks_per_core),
            in_specs=[
                pl.BlockSpec((c, tn), lambda p, b: (0, p * blocks_per_core + b)),  # logits
                pl.BlockSpec((1, tn), lambda p, b: (0, p * blocks_per_core + b)),  # targets
                pl.BlockSpec((c, 1), lambda p, b: (0, 0)),                          # alpha
            ],
            out_specs=pl.BlockSpec((1, 1), lambda p, b: (p, 0)),
            scratch_shapes=[pltpu.VMEM((1, tn), jnp.float32)],
        ),
        compiler_params=pltpu.CompilerParams(
            dimension_semantics=("parallel", "arbitrary"),
            vmem_limit_bytes=32 * 1024 * 1024,
        ),
    )(predict_t, target_row, alpha_col)

    loss = jnp.sum(partials)
    if reduction == "mean":
        loss = loss / n
    return loss


def _reference_jax(predict, target, gamma=2.0, alpha=None, class_num=2,
                   reduction="mean", eps=0.2, faithful_negative_probs=True):
    n, c = predict.shape
    if alpha is None:
        alpha = jnp.ones((c, 1), jnp.float32)
    one_hot = jax.nn.one_hot(target, c, dtype=jnp.float32)
    one_hot = one_hot * (1.0 - eps) + (1.0 - one_hot) * eps / (c - 1)
    pt = jax.nn.softmax(predict.astype(jnp.float32), axis=1)
    s = jnp.sum(one_hot * pt, axis=1)
    probs = (-s if faithful_negative_probs else s) + 1e-10
    log_prb = jnp.log(probs)
    a = jnp.asarray(alpha, jnp.float32).reshape(-1)[target]
    loss = -a * (1.0 - probs) ** float(gamma) * log_prb
    if reduction == "mean":
        return jnp.mean(loss)
    return jnp.sum(loss)


if __name__ == "__main__":
    key = jax.random.PRNGKey(0)
    k_pred, k_tgt, k_pred2, k_tgt2 = jax.random.split(key, 4)

    # Small shapes consistent with the module defaults (batch of logits over 2 classes).
    N, C = 8, 2
    predict = jax.random.normal(k_pred, (N, C), dtype=jnp.float32)
    target = jax.random.randint(k_tgt, (N,), 0, C, dtype=jnp.int32)

    loss = jax.block_until_ready(
        bce_focal_loss_pallas(predict, target, gamma=2, class_num=C, reduction="mean"))
    ref = jax.block_until_ready(
        _reference_jax(predict, target, gamma=2, class_num=C, reduction="mean"))
    # The reference's probs = -(one_hot*pt).sum(1)+1e-10 is negative, so its log (and the
    # returned loss) is NaN by construction; the kernel reproduces this faithfully.
    np.testing.assert_allclose(np.asarray(loss), np.asarray(ref),
                               rtol=1e-5, atol=1e-6, equal_nan=True)

    # Numerically meaningful end-to-end check (tiling, dual-core partials, padded-tail
    # masking, softmax/one-hot algebra) with the sign bug disabled in BOTH kernel and ref.
    N2, C2 = 1000, 4
    predict2 = jax.random.normal(k_pred2, (N2, C2), dtype=jnp.float32)
    target2 = jax.random.randint(k_tgt2, (N2,), 0, C2, dtype=jnp.int32)
    for red in ("mean", "sum"):
        got = jax.block_until_ready(
            bce_focal_loss_pallas(predict2, target2, gamma=2, class_num=C2, reduction=red,
                                  lane_tile=128, faithful_negative_probs=False))
        want = jax.block_until_ready(
            _reference_jax(predict2, target2, gamma=2, class_num=C2, reduction=red,
                           faithful_negative_probs=False))
        np.testing.assert_allclose(np.asarray(got), np.asarray(want), rtol=1e-4, atol=1e-5)

    print("KERNEL_OK")
</pallas_src>

<mosaic_0001>
module attributes {stable_mosaic.version = 11 : i64} {
  func.func @kernel(%arg0: i32, %arg1: i32, %arg2: memref<2x128xf32, #tpu.memory_space<vmem>>, %arg3: memref<1x128xi32, #tpu.memory_space<vmem>>, %arg4: memref<2x1xf32, #tpu.memory_space<vmem>>, %arg5: memref<1x1xf32, #tpu.memory_space<vmem>>, %arg6: memref<1x128xf32, #tpu.memory_space<vmem>>) attributes {dimension_semantics = [#tpu.dimension_semantics<parallel>, #tpu.dimension_semantics<arbitrary>], iteration_bounds = array<i64: 1, 1>, scalar_prefetch = 0 : i64, scratch_operands = 1 : i64, tpu.core_type = #tpu.core_type<tc>, window_params = [{transform_indices = @transform_0, window_bounds = array<i64: 2, 128>}, {transform_indices = @transform_1, window_bounds = array<i64: 1, 128>}, {pipeline_mode = #tpu.pipeline_mode<synchronous>, transform_indices = @transform_2, window_bounds = array<i64: 2, 1>}, {transform_indices = @transform_3, window_bounds = array<i64: 1, 1>}]} {
    %c0_i32 = arith.constant 0 : i32
    %0 = arith.cmpi eq, %arg1, %c0_i32 : i32
    %1 = arith.extui %0 : i1 to i32
    %c0_i32_0 = arith.constant 0 : i32
    %2 = arith.cmpi ne, %1, %c0_i32_0 : i32
    scf.if %2 {
      %cst_21 = arith.constant 0.000000e+00 : f32
      %53 = vector.broadcast %cst_21 : f32 to vector<1x128xf32>
      %c0_22 = arith.constant 0 : index
      %c0_23 = arith.constant 0 : index
      %54 = vector.load %arg6[%c0_22, %c0_23] : memref<1x128xf32, #tpu.memory_space<vmem>>, vector<1x128xf32>
      tpu.vector_store %arg6[%c0_22, %c0_23], %53 {strides = array<i32>} : memref<1x128xf32, #tpu.memory_space<vmem>>, vector<1x128xf32>,
    } else {
    }
    %c0 = arith.constant 0 : index
    %c0_1 = arith.constant 0 : index
    %3 = vector.load %arg2[%c0, %c0_1] : memref<2x128xf32, #tpu.memory_space<vmem>>, vector<2x128xf32>
    %c0_2 = arith.constant 0 : index
    %c0_3 = arith.constant 0 : index
    %4 = vector.load %arg3[%c0_2, %c0_3] : memref<1x128xi32, #tpu.memory_space<vmem>>, vector<1x128xi32>
    %c0_4 = arith.constant 0 : index
    %c0_5 = arith.constant 0 : index
    %5 = vector.load %arg4[%c0_4, %c0_5] : memref<2x1xf32, #tpu.memory_space<vmem>>, vector<2x1xf32>
    %cst = arith.constant dense<0xFF800000> : vector<128xf32>
    %6 = vector.multi_reduction <maximumf>, %3, %cst [0] : vector<2x128xf32> to vector<128xf32>
    %7 = vector.shape_cast %6 : vector<128xf32> to vector<1x128xf32>
    %8 = vector.broadcast %7 : vector<1x128xf32> to vector<2x128xf32>
    %9 = arith.subf %3, %8 : vector<2x128xf32>
    %10 = math.exp %9 : vector<2x128xf32>
    %cst_6 = arith.constant dense<0.000000e+00> : vector<128xf32>
    %11 = vector.multi_reduction <add>, %10, %cst_6 [0] : vector<2x128xf32> to vector<128xf32>
    %12 = vector.shape_cast %11 : vector<128xf32> to vector<1x128xf32>
    %13 = tpu.iota {dimensions = array<i32: 0>} : vector<2x128xi32>
    %14 = vector.broadcast %4 : vector<1x128xi32> to vector<2x128xi32>
    %15 = arith.cmpi eq, %13, %14 : vector<2x128xi32>
    %16 = arith.extui %15 : vector<2x128xi1> to vector<2x128xi32>
    %17 = arith.sitofp %16 : vector<2x128xi32> to vector<2x128xf32>
    %18 = arith.mulf %17, %10 : vector<2x128xf32>
    %cst_7 = arith.constant dense<0.000000e+00> : vector<128xf32>
    %19 = vector.multi_reduction <add>, %18, %cst_7 [0] : vector<2x128xf32> to vector<128xf32>
    %20 = vector.shape_cast %19 : vector<128xf32> to vector<1x128xf32>
    %21 = vector.broadcast %5 : vector<2x1xf32> to vector<2x128xf32>
    %22 = arith.mulf %17, %21 : vector<2x128xf32>
    %cst_8 = arith.constant dense<0.000000e+00> : vector<128xf32>
    %23 = vector.multi_reduction <add>, %22, %cst_8 [0] : vector<2x128xf32> to vector<128xf32>
    %24 = vector.shape_cast %23 : vector<128xf32> to vector<1x128xf32>
    %25 = arith.divf %20, %12 : vector<1x128xf32>
    %cst_9 = arith.constant 6.000000e-01 : f32
    %26 = vector.broadcast %cst_9 : f32 to vector<1x128xf32>
    %27 = arith.mulf %26, %25 : vector<1x128xf32>
    %cst_10 = arith.constant 2.000000e-01 : f32
    %28 = vector.broadcast %cst_10 : f32 to vector<1x128xf32>
    %29 = arith.addf %27, %28 : vector<1x128xf32>
    %cst_11 = arith.constant -1.000000e+00 : f32
    %30 = vector.broadcast %cst_11 : f32 to vector<1x128xf32>
    %31 = arith.mulf %30, %29 : vector<1x128xf32>
    %cst_12 = arith.constant 1.000000e-10 : f32
    %32 = vector.broadcast %cst_12 : f32 to vector<1x128xf32>
    %33 = arith.addf %31, %32 : vector<1x128xf32>
    %34 = math.log %33 : vector<1x128xf32>
    %cst_13 = arith.constant 1.000000e+00 : f32
    %35 = vector.broadcast %cst_13 : f32 to vector<1x128xf32>
    %36 = arith.subf %35, %33 : vector<1x128xf32>
    %37 = arith.mulf %36, %36 : vector<1x128xf32>
    %cst_14 = arith.constant 0.000000e+00 : f32
    %38 = vector.broadcast %cst_14 : f32 to vector<1x128xf32>
    %39 = arith.subf %38, %24 : vector<1x128xf32>
    %40 = arith.mulf %39, %37 : vector<1x128xf32>
    %41 = arith.mulf %40, %34 : vector<1x128xf32>
    %c1_i32 = arith.constant 1 : i32
    %42 = arith.muli %arg0, %c1_i32 : i32
    %43 = arith.addi %42, %arg1 : i32
    %c0_i32_15 = arith.constant 0 : i32
    %44 = arith.cmpi slt, %43, %c0_i32_15 : i32
    %45 = arith.extui %44 : i1 to i32
    %c0_i32_16 = arith.constant 0 : i32
    %46 = arith.cmpi ne, %45, %c0_i32_16 : i32
    scf.if %46 {
      %c0_21 = arith.constant 0 : index
      %c0_22 = arith.constant 0 : index
      %53 = vector.load %arg6[%c0_21, %c0_22] : memref<1x128xf32, #tpu.memory_space<vmem>>, vector<1x128xf32>
      %54 = arith.addf %53, %41 : vector<1x128xf32>
      %c0_23 = arith.constant 0 : index
      %c0_24 = arith.constant 0 : index
      %55 = vector.load %arg6[%c0_23, %c0_24] : memref<1x128xf32, #tpu.memory_space<vmem>>, vector<1x128xf32>
      tpu.vector_store %arg6[%c0_23, %c0_24], %54 {strides = array<i32>} : memref<1x128xf32, #tpu.memory_space<vmem>>, vector<1x128xf32>,
    } else {
    }
    %c0_i32_17 = arith.constant 0 : i32
    %47 = arith.cmpi sge, %43, %c0_i32_17 : i32
    %48 = arith.extui %47 : i1 to i32
    %c0_i32_18 = arith.constant 0 : i32
    %49 = arith.cmpi ne, %48, %c0_i32_18 : i32
    scf.if %49 {
      %c128_i32 = arith.constant 128 : i32
      %53 = arith.muli %43, %c128_i32 : i32
      %54 = tpu.iota {dimensions = array<i32: 1>} : vector<1x128xi32>
      %55 = vector.broadcast %53 : i32 to vector<1x128xi32>
      %56 = arith.addi %55, %54 : vector<1x128xi32>
      %c0_21 = arith.constant 0 : index
      %c0_22 = arith.constant 0 : index
      %57 = vector.load %arg6[%c0_21, %c0_22] : memref<1x128xf32, #tpu.memory_space<vmem>>, vector<1x128xf32>
      %c8_i32 = arith.constant 8 : i32
      %58 = vector.broadcast %c8_i32 : i32 to vector<1x128xi32>
      %59 = arith.cmpi slt, %56, %58 : vector<1x128xi32>
      %cst_23 = arith.constant 0.000000e+00 : f32
      %60 = vector.broadcast %cst_23 : f32 to vector<1x128xf32>
      %61 = arith.select %59, %41, %60 : vector<1x128xi1>, vector<1x128xf32>
      %62 = arith.addf %57, %61 : vector<1x128xf32>
      %c0_24 = arith.constant 0 : index
      %c0_25 = arith.constant 0 : index
      %63 = vector.load %arg6[%c0_24, %c0_25] : memref<1x128xf32, #tpu.memory_space<vmem>>, vector<1x128xf32>
      tpu.vector_store %arg6[%c0_24, %c0_25], %62 {strides = array<i32>} : memref<1x128xf32, #tpu.memory_space<vmem>>, vector<1x128xf32>,
    } else {
    }
    %c0_i32_19 = arith.constant 0 : i32
    %50 = arith.cmpi eq, %arg1, %c0_i32_19 : i32
    %51 = arith.extui %50 : i1 to i32
    %c0_i32_20 = arith.constant 0 : i32
    %52 = arith.cmpi ne, %51, %c0_i32_20 : i32
    scf.if %52 {
      %c0_21 = arith.constant 0 : index
      %c0_22 = arith.constant 0 : index
      %53 = vector.load %arg6[%c0_21, %c0_22] : memref<1x128xf32, #tpu.memory_space<vmem>>, vector<1x128xf32>
      %cst_23 = arith.constant dense<0.000000e+00> : vector<1xf32>
      %54 = vector.multi_reduction <add>, %53, %cst_23 [1] : vector<1x128xf32> to vector<1xf32>
      %55 = vector.shape_cast %54 : vector<1xf32> to vector<1x1xf32>
      %c0_24 = arith.constant 0 : index
      %c0_25 = arith.constant 0 : index
      %56 = vector.load %arg5[%c0_24, %c0_25] : memref<1x1xf32, #tpu.memory_space<vmem>>, vector<1x1xf32>
      tpu.vector_store %arg5[%c0_24, %c0_25], %55 {strides = array<i32>} : memref<1x1xf32, #tpu.memory_space<vmem>>, vector<1x1xf32>,
    } else {
    }
    return
  }
  func.func @transform_0(%arg0: i32, %arg1: i32) -> (i32, i32) {
    %c1_i32 = arith.constant 1 : i32
    %0 = arith.muli %arg0, %c1_i32 : i32
    %1 = arith.addi %0, %arg1 : i32
    %c0_i32 = arith.constant 0 : i32
    %c0_i32_0 = arith.constant 0 : i32
    return %c0_i32, %1 : i32, i32
  }
  func.func @transform_1(%arg0: i32, %arg1: i32) -> (i32, i32) {
    %c1_i32 = arith.constant 1 : i32
    %0 = arith.muli %arg0, %c1_i32 : i32
    %1 = arith.addi %0, %arg1 : i32
    %c0_i32 = arith.constant 0 : i32
    %c0_i32_0 = arith.constant 0 : i32
    return %c0_i32, %1 : i32, i32
  }
  func.func @transform_2(%arg0: i32, %arg1: i32) -> (i32, i32) {
    %c0_i32 = arith.constant 0 : i32
    %c0_i32_0 = arith.constant 0 : i32
    %c0_i32_1 = arith.constant 0 : i32
    return %c0_i32, %c0_i32_0 : i32, i32
  }
  func.func @transform_3(%arg0: i32, %arg1: i32) -> (i32, i32) {
    %c0_i32 = arith.constant 0 : i32
    %c0_i32_0 = arith.constant 0 : i32
    return %arg0, %c0_i32 : i32, i32
  }
}

</mosaic_0001>

<bundles_post_ra>
// kernel: tpu_custom_call.1
= control target key start
LH: loop header
LB: loop body
LE: loop exit
PB: predicated region body
PF: predicated region fallthrough
CT: control target
= control target key end

     0   :  { %v204_v1 = vmov 0   ;;  %v205_v2 = vmov 0.0   ;;  %s243_s0 = inlined_call_operand.vmem [shape: f32[2,128], index: 0, kind: input, shape index: {}]   ;;  %s244_s1 = inlined_call_operand.vmem [shape: s32[1,128], index: 1, kind: input, shape index: {}]   ;;  %s245_s2 = inlined_call_operand.vmem [shape: f32[2,1], index: 2, kind: input, shape index: {}]   ;;  %s246_s3 = inlined_call_operand.hbm [shape: f32[1,1], index: 3, kind: output, shape index: {}]  }
   0x1   :  { %v53_v0 = vld [vmem:[%s245_s2] sm:$0x3]  ;;  %175 = vset.pattern.permute.xlu0 %v204_v1  ;;  %50 = vst [vmem:[#allocation2] sm:$0x1] %v205_v2 }
   0x2   :  { %8 = vsyncpa [#allocation4], 0  ;;  %91 = vperm.xlu0 %175, %v53_v0   ;;  %vm54_vm0 = vcmask 1041408   ;;  %v51_v3 = vld [vmem:[%s243_s0] sm:$0x3]  ;;  %v72_v14 = vlaneseq  ;;  %vm141_vm3 = vcmask 1040384  }
   0x3   :  { %v55_v4 = vsel %vm54_vm0, %v51_v3, -inf  ;;  %v170_v17 = vld [vmem:[%s244_s1] ss:$0 sm:$0xff]  ;;  %s206_s0 = smov [#allocation3]   ;;  %vm145_vm4 = vcmask 0  }
   0x4   :  { %v56_v5 = vrot.slane %v55_v4, 4  ;;  %v73_v16 = vshrl.u32 %v72_v14, 7  ;;  %v129_v51 = vand.u32 127, %v72_v14  ;;  %s153_s1 = sshll.u32 %s206_s0, 4  ;;  %s154_s1 = int_to_ptr.vmem [resolvable:$true] %s153_s1 }
   0x5   :  { %s182_s17 = scalar_lea.vmem %s154_s1, 16  ;;  %s186_s18 = scalar_lea.vmem %s154_s1, 32 }
   0x6   :  { %v57_v6 = vmax.f32 %v55_v4, %v56_v5  ;;  %vm78_vm1 = vcmp.eq.s32.totalorder %v73_v16, %v170_v17  ;;  %vm133_vm2 = vcmp.lt.s32.totalorder %v129_v51, 8  ;;  %p183_p0 = scmp.ne.s32.totalorder %s154_s1, %s182_s17  ;;  %p187_p1 = scmp.lt.s32.totalorder %s154_s1, %s154_s1 }
   0x7   :  { %v171_v20 = vsel %vm78_vm1, 1.0, %v205_v2  ;;  %p188_p2 = scmp.lt.s32.totalorder %s186_s18, %s182_s17 }
   0x8   :  { %v58_v7 = vrot.slane %v57_v6, 2  ;;  %v132_v56 = vld [vmem:[#allocation2] sm:$0x1] }
   0x9   :  { %p189_p3 = por %p188_p2, %p187_p1 }
   0xa   :  { %v59_v8 = vmax.f32 %v57_v6, %v58_v7 }
   0xb   :  { %p190_p4 = pnand %p189_p3, %p183_p0 }
   0xc   :  { %v60_v9 = vrot.slane %v59_v8, 1 }
   0xe   :  { %v61_v10 = vmax.f32 %v59_v8, %v60_v9 }
  0x10   :  { %v62_v11 = vsub.f32 %v51_v3, %v61_v10 }
  0x12   :  { %v63_v12 = vmul.f32 1.442695, %v62_v11 }
  0x14   :  { %176 = vpow2.f32 %v63_v12 }
  0x21   :  { %v177_v13 = vpop.eup %176 }
  0x22   :  { %v65_v15 = vsel %vm54_vm0, %v177_v13, 0.0  ;;  %v81_v22 = vmul.f32 %v177_v13, %v171_v20 }
  0x23   :  { %v66_v18 = vrot.slane %v65_v15, 4 }
  0x24   :  { %v82_v24 = vsel %vm54_vm0, %v81_v22, 0.0 }
  0x25   :  { %v67_v19 = vadd.f32 %v66_v18, %v65_v15  ;;  %v83_v26 = vrot.slane %v82_v24, 4 }
  0x27   :  { %v68_v21 = vrot.slane %v67_v19, 2  ;;  %v84_v28 = vadd.f32 %v83_v26, %v82_v24 }
  0x29   :  { %v69_v23 = vadd.f32 %v68_v21, %v67_v19  ;;  %v85_v29 = vrot.slane %v84_v28, 2 }
  0x2b   :  { %v70_v25 = vrot.slane %v69_v23, 1  ;;  %v86_v30 = vadd.f32 %v85_v29, %v84_v28 }
  0x2d   :  { %v71_v27 = vadd.f32 %v70_v25, %v69_v23  ;;  %v87_v31 = vrot.slane %v86_v30, 1 }
  0x2f   :  { %178 = vrcp.f32 %v71_v27  ;;  %v88_v32 = vadd.f32 %v87_v31, %v86_v30 }
  0x3c   :  { %v179_v33 = vpop.eup %178 }
  0x3d   :  { %v103_v34 = vmul.f32 %v179_v33, %v88_v32 }
  0x3f   :  { %v104_v35 = vmul.f32 0.6, %v103_v34 }
  0x41   :  { %v105_v36 = vadd.f32 0.2, %v104_v35 }
  0x43   :  { %v106_v37 = vmul.f32 -1.0, %v105_v36 }
  0x45   :  { %v107_v38 = vadd.f32 1e-10, %v106_v37 }
  0x47   :  { %180 = vlog2.f32 %v107_v38  ;;  %v110_v46 = vsub.f32 1.0, %v107_v38 }
  0x49   :  { %v111_v50 = vmul.f32 %v110_v46, %v110_v46 }
  0x54   :  { %v181_v48 = vpop.eup %180 }
  0x55   :  { %v109_v52 = vmul.f32 0.6931472, %v181_v48 }
  0x7d   :  { %v92_v39 = vpop.permute.xlu0 %91 }
  0x7e   :  { %v94_v40 = vmul.f32 %v171_v20, %v92_v39 }
  0x80   :  { %v95_v41 = vsel %vm54_vm0, %v94_v40, 0.0 }
  0x81   :  { %v96_v42 = vrot.slane %v95_v41, 4 }
  0x83   :  { %v97_v43 = vadd.f32 %v96_v42, %v95_v41 }
  0x85   :  { %v98_v44 = vrot.slane %v97_v43, 2 }
  0x87   :  { %v99_v45 = vadd.f32 %v98_v44, %v97_v43 }
  0x89   :  { %v100_v47 = vrot.slane %v99_v45, 1 }
  0x8b   :  { %v101_v49 = vadd.f32 %v100_v47, %v99_v45 }
  0x8d   :  { %v112_v53 = vsub.f32 0.0, %v101_v49 }
  0x8f   :  { %v113_v54 = vmul.f32 %v112_v53, %v111_v50 }
  0x91   :  { %v114_v55 = vmul.f32 %v113_v54, %v109_v52 }
  0x93   :  { %v134_v57 = vsel %vm133_vm2, %v114_v55, 0.0 }
  0x94   :  { %v135_v58 = vadd.f32 %v134_v57, %v132_v56 }
  0x96   :  { %136 = vst [vmem:[#allocation2] sm:$0x1] %v135_v58 }
  0x9d   :  { %v140_v59 = vld [vmem:[#allocation2] sm:$0x1] }
  0x9e   :  { %v142_v60 = vsel %vm141_vm3, %v140_v59, 0.0 }
  0x9f   :  { %143 = vadd.xlane.f32.xlu0 %v142_v60 }
 0x128   :  { %v144_v61 = vpop.xlane.xlu0 %143 }
 0x129   :  { %146 = vst.msk [vmem:[#allocation3] sm:$0x1] %vm145_vm4, %v144_v61 }
 0x12a   :  { %193 = shalt.err (!%p190_p4)
}
 0x12b   :  { %156 = dma.vmem_to_hbm [thread:$0]  %s154_s1, 16, %s246_s3, [#allocation4]  }
 0x12c   :  { %202 = dma.done.wait [#allocation4], 16  }
 0x12d   :  { %203 = vsyncadd [#allocation4], 4294967280 }
 0x12e   :  { %160 = vsyncpa [#allocation4], 1 }

</bundles_post_ra>
